<compile_context>
chip_gen: v5e
topology: v5e:2x2
jax: 0.10.0
libtpu: 0.0.40
codegen_flags: <defaults>
</compile_context>

<pallas_src>
import math
from functools import partial

import jax
import jax.numpy as jnp
from jax.experimental import pallas as pl
from jax.experimental.pallas import tpu as pltpu


_NEG_LARGE = -1e30            # softmax mask / running-max init (avoids inf-inf)
_VMEM_FLOOR = 32 * 1024 * 1024
_VMEM_CAP = 48 * 1024 * 1024  # safe on v7x (64 MiB physical VMEM per TC)


def _vmem_limit(nbytes):
    """Per-call scoped-VMEM request, clamped to a range safe on v5e/v6e/v7x."""
    return int(min(max(int(nbytes), _VMEM_FLOOR), _VMEM_CAP))


# ----------------------------------------------------------------------------
# Linear projection kernel (row-tiled y = x @ w + b)
# ----------------------------------------------------------------------------

def _linear_kernel(x_ref, w_ref, b_ref, o_ref):
    acc = jnp.dot(x_ref[...], w_ref[...], preferred_element_type=jnp.float32)
    acc = acc + b_ref[...].astype(jnp.float32)
    o_ref[...] = acc.astype(o_ref.dtype)


def linear(x2d, w, b, *, out_dtype=None, block_rows=512):
    """Row-tiled, pipelined linear. x2d:(N,Din) w:(Din,Dout) b:(Dout,)."""
    n, din = x2d.shape
    dout = w.shape[1]
    out_dtype = out_dtype or x2d.dtype

    tm = n if n <= block_rows else block_rows        # full (no pad) or mult-of-8
    n_pad = pl.cdiv(n, tm) * tm
    x_in = x2d if n_pad == n else jnp.pad(x2d, ((0, n_pad - n), (0, 0)))

    xb = x2d.dtype.itemsize
    need = (2 * (tm * din + din * dout + dout) * xb
            + 2 * tm * dout * jnp.dtype(out_dtype).itemsize
            + 4 * tm * dout)                          # f32 accumulator
    out = pl.pallas_call(
        _linear_kernel,
        out_shape=jax.ShapeDtypeStruct((n_pad, dout), out_dtype),
        grid=(n_pad // tm,),
        in_specs=[
            pl.BlockSpec((tm, din), lambda i: (i, 0)),     # row tile
            pl.BlockSpec((din, dout), lambda i: (0, 0)),   # full weight (resident)
            pl.BlockSpec((1, dout), lambda i: (0, 0)),     # bias
        ],
        out_specs=pl.BlockSpec((tm, dout), lambda i: (i, 0)),
        compiler_params=pltpu.CompilerParams(
            dimension_semantics=("parallel",),
            vmem_limit_bytes=_vmem_limit(2 * need)),
    )(x_in, w, b.reshape(1, dout))
    return out if n_pad == n else out[:n]


# ----------------------------------------------------------------------------
# Flash-style multi-head attention kernels
# ----------------------------------------------------------------------------

def _flash_attention_step(q_ref, k_ref, v_ref, m_ref, l_ref, acc_ref, *,
                          n_heads, d_keys, d_values, scale, s_actual,
                          mask_keys):
    """Online-softmax update for one S tile, all heads of one (b, L-tile).

    q_ref:(1,TL,H*E)  k_ref:(1,TS,H*E)  v_ref:(1,TS,H*Dv)
    m_ref/l_ref:(H,TL,1) f32   acc_ref:(H,TL,Dv) f32
    """
    H, E, Dv = n_heads, d_keys, d_values
    TL = q_ref.shape[1]
    TS = k_ref.shape[1]
    st = pl.program_id(2)

    @pl.when(st == 0)
    def _():
        m_ref[...] = jnp.full(m_ref.shape, _NEG_LARGE, jnp.float32)
        l_ref[...] = jnp.zeros(l_ref.shape, jnp.float32)
        acc_ref[...] = jnp.zeros(acc_ref.shape, jnp.float32)

    if mask_keys:  # S was padded to a multiple of TS -> mask the padded keys.
        cols = st * TS + jax.lax.broadcasted_iota(jnp.int32, (TL, TS), 1)
        key_mask = cols < s_actual

    for h in range(H):
        qh = q_ref[0, :, h * E:(h + 1) * E]
        kh = k_ref[0, :, h * E:(h + 1) * E]
        vh = v_ref[0, :, h * Dv:(h + 1) * Dv]
        # Scale folded into q (TL*E mults, not TL*TS); contraction over E via
        # dot_general so k.T is never materialized.
        s = jax.lax.dot_general(qh * scale, kh,
                                dimension_numbers=(((1,), (1,)), ((), ())),
                                preferred_element_type=jnp.float32)   # (TL, TS)
        if mask_keys:
            s = jnp.where(key_mask, s, _NEG_LARGE)

        m_prev = m_ref[h]                                            # (TL, 1)
        m_new = jnp.maximum(m_prev, jnp.max(s, axis=-1, keepdims=True))
        alpha = jnp.exp(m_prev - m_new)
        p = jnp.exp(s - m_new)                                       # (TL, TS)
        l_ref[h] = alpha * l_ref[h] + jnp.sum(p, axis=-1, keepdims=True)
        acc_ref[h] = alpha * acc_ref[h] + jnp.dot(
            p.astype(vh.dtype), vh, preferred_element_type=jnp.float32)
        m_ref[h] = m_new


def _flash_mha_project_kernel(q_ref, k_ref, v_ref, wo_ref, bo_ref, o_ref,
                              m_ref, l_ref, acc_ref, *, n_heads, d_keys,
                              d_values, scale, s_actual, mask_keys):
    """Flash attention + fused output projection. o_ref:(1,TL,M) lane-dense."""
    _flash_attention_step(q_ref, k_ref, v_ref, m_ref, l_ref, acc_ref,
                          n_heads=n_heads, d_keys=d_keys, d_values=d_values,
                          scale=scale, s_actual=s_actual, mask_keys=mask_keys)

    @pl.when(pl.program_id(2) == pl.num_programs(2) - 1)
    def _():
        # Normalization folded into the (TL,Dv) context, then ONE big matmul
        # with the full H*Dv (= d_model) contraction against wo.
        parts = [acc_ref[h] * pl.reciprocal(l_ref[h], approx=True)
                 for h in range(n_heads)]
        ctx = jnp.concatenate(parts, axis=-1)                 # (TL, H*Dv)
        out = jnp.dot(ctx.astype(wo_ref.dtype), wo_ref[...],
                      preferred_element_type=jnp.float32)
        out = out + bo_ref[...].astype(jnp.float32)
        o_ref[0] = out.astype(o_ref.dtype)


def _flash_mha_ctx_kernel(q_ref, k_ref, v_ref, o_ref, m_ref, l_ref, acc_ref, *,
                          n_heads, d_keys, d_values, scale, s_actual,
                          mask_keys):
    """Flash attention, context written head-major: o_ref:(1,H,TL,Dv)."""
    _flash_attention_step(q_ref, k_ref, v_ref, m_ref, l_ref, acc_ref,
                          n_heads=n_heads, d_keys=d_keys, d_values=d_values,
                          scale=scale, s_actual=s_actual, mask_keys=mask_keys)

    @pl.when(pl.program_id(2) == pl.num_programs(2) - 1)
    def _():
        for h in range(n_heads):
            o_ref[0, h] = (acc_ref[h] * pl.reciprocal(l_ref[h], approx=True)
                           ).astype(o_ref.dtype)


def flash_mha(q3, k3, v3, wo=None, bo=None, *, scale, n_heads, d_values,
              out_dtype, project, block_q=256, block_k=512):
    """q3:(B,L,H*E) k3:(B,S,H*E) v3:(B,S,H*Dv).

    project=True : fused out-projection, returns (B,L,M)  (wo:(H*Dv,M) bo:(M,))
    project=False: returns head-major context (B,H,L,Dv) (mix=True path)
    """
    B, L, HE = q3.shape
    S = k3.shape[1]
    H = n_heads
    E = HE // H
    Dv = d_values
    HDv = H * Dv

    TL = L if L <= block_q else block_q
    TS = S if S <= block_k else block_k
    L_pad = pl.cdiv(L, TL) * TL
    S_pad = pl.cdiv(S, TS) * TS
    if L_pad != L:
        q3 = jnp.pad(q3, ((0, 0), (0, L_pad - L), (0, 0)))
    if S_pad != S:
        k3 = jnp.pad(k3, ((0, 0), (0, S_pad - S), (0, 0)))
        v3 = jnp.pad(v3, ((0, 0), (0, S_pad - S), (0, 0)))
    mask_keys = (S_pad != S)

    grid = (B, L_pad // TL, S_pad // TS)
    cdt_b = q3.dtype.itemsize
    out_b = jnp.dtype(out_dtype).itemsize

    common_in = [
        pl.BlockSpec((1, TL, HE), lambda b, lt, st: (b, lt, 0)),
        pl.BlockSpec((1, TS, HE), lambda b, lt, st: (b, st, 0)),
        pl.BlockSpec((1, TS, HDv), lambda b, lt, st: (b, st, 0)),
    ]
    scratch = [
        pltpu.VMEM((H, TL, 1), jnp.float32),    # running max
        pltpu.VMEM((H, TL, 1), jnp.float32),    # running denominator
        pltpu.VMEM((H, TL, Dv), jnp.float32),   # running (unnormalized) output
    ]
    need = (2 * (TL * HE + TS * HE + TS * HDv) * cdt_b      # pipelined inputs
            + 4 * (2 * H * TL + H * TL * Dv)                # scratch (f32)
            + 4 * (3 * TL * TS + TL * HDv))                 # per-head temps
    compiler_params = lambda n: pltpu.CompilerParams(        # noqa: E731
        dimension_semantics=("parallel", "parallel", "arbitrary"),
        vmem_limit_bytes=_vmem_limit(2 * n))

    if project:
        M = wo.shape[1]
        kern = partial(_flash_mha_project_kernel, n_heads=H, d_keys=E,
                       d_values=Dv, scale=scale, s_actual=S,
                       mask_keys=mask_keys)
        need += 2 * (HDv * M + M) * cdt_b + 2 * TL * M * out_b + 4 * TL * M
        out = pl.pallas_call(
            kern,
            out_shape=jax.ShapeDtypeStruct((B, L_pad, M), out_dtype),
            grid=grid,
            in_specs=common_in + [
                pl.BlockSpec((HDv, M), lambda b, lt, st: (0, 0)),
                pl.BlockSpec((1, M), lambda b, lt, st: (0, 0)),
            ],
            out_specs=pl.BlockSpec((1, TL, M), lambda b, lt, st: (b, lt, 0)),
            scratch_shapes=scratch,
            compiler_params=compiler_params(need),
        )(q3, k3, v3, wo, bo.reshape(1, M))
        return out if L_pad == L else out[:, :L]

    kern = partial(_flash_mha_ctx_kernel, n_heads=H, d_keys=E, d_values=Dv,
                   scale=scale, s_actual=S, mask_keys=mask_keys)
    need += 2 * H * TL * Dv * out_b
    out = pl.pallas_call(
        kern,
        out_shape=jax.ShapeDtypeStruct((B, H, L_pad, Dv), out_dtype),
        grid=grid,
        in_specs=common_in,
        out_specs=pl.BlockSpec((1, H, TL, Dv), lambda b, lt, st: (b, 0, lt, 0)),
        scratch_shapes=scratch,
        compiler_params=compiler_params(need),
    )(q3, k3, v3)
    return out if L_pad == L else out[:, :, :L]


# ----------------------------------------------------------------------------
# AttentionLayer forward
# ----------------------------------------------------------------------------

def attention_layer_forward(params, queries, keys, values, attn_mask=None,
                            n_heads=4, mix=False, compute_dtype=None,
                            block_rows=512, block_q=256, block_k=512):
    """AttentionLayer.forward with FullAttention(mask_flag=False).

    queries:(B,L,d_model) keys/values:(B,S,d_model). Returns (out, None).
    compute_dtype: run the MXU matmuls in bf16 (f32 accumulation); recommended
    on v5e. Default keeps the input dtype for exact parity with PyTorch.
    """
    assert attn_mask is None, (
        "FullAttention(mask_flag=False): attn_mask must be None "
        "(masked attention is not implemented in this kernel)")
    orig_dtype = queries.dtype
    cdt = compute_dtype or orig_dtype

    B, L, d_model = queries.shape
    S = keys.shape[1]
    H = n_heads

    wq = params["wq"].astype(cdt)
    wk = params["wk"].astype(cdt)
    wv = params["wv"].astype(cdt)
    wo = params["wo"].astype(cdt)
    HE = wq.shape[1]
    HDv = wv.shape[1]
    E = HE // H
    Dv = HDv // H
    scale = 1.0 / math.sqrt(E)

    if queries is keys and keys is values:
        # Self-attention fast path: one fused QKV projection (activations read
        # from HBM once, one kernel launch instead of three).
        w_qkv = jnp.concatenate([wq, wk, wv], axis=1)
        b_qkv = jnp.concatenate([params["bq"], params["bk"], params["bv"]])
        qkv = linear(queries.reshape(B * L, d_model).astype(cdt), w_qkv, b_qkv,
                     out_dtype=cdt, block_rows=block_rows)
        # TODO(synk): the lane splits below are XLA slices; they could be
        # avoided by block-indexing the fused array directly in flash_mha.
        q = qkv[:, :HE]
        k = qkv[:, HE:2 * HE]
        v = qkv[:, 2 * HE:2 * HE + HDv]
    else:
        q = linear(queries.reshape(B * L, d_model).astype(cdt), wq,
                   params["bq"], out_dtype=cdt, block_rows=block_rows)
        k = linear(keys.reshape(B * S, d_model).astype(cdt), wk,
                   params["bk"], out_dtype=cdt, block_rows=block_rows)
        v = linear(values.reshape(B * S, d_model).astype(cdt), wv,
                   params["bv"], out_dtype=cdt, block_rows=block_rows)

    # Free reshapes only — head split handled inside the attention kernel.
    q3 = q.reshape(B, L, HE)
    k3 = k.reshape(B, S, HE)
    v3 = v.reshape(B, S, HDv)

    if not mix:
        out = flash_mha(q3, k3, v3, wo=wo, bo=params["bo"], scale=scale,
                        n_heads=H, d_values=Dv, out_dtype=orig_dtype,
                        project=True, block_q=block_q, block_k=block_k)
        return out, None

    # mix=True: PyTorch does (B,L,H,Dv) -> transpose(2,1) -> contiguous ->
    # view(B,L,-1). The ctx kernel writes (B,H,L,Dv) directly, so the
    # re-interleave is a free reshape here (no HBM transpose).
    ctx = flash_mha(q3, k3, v3, scale=scale, n_heads=H, d_values=Dv,
                    out_dtype=cdt, project=False,
                    block_q=block_q, block_k=block_k)       # (B, H, L, Dv)
    ctx = ctx.reshape(B * L, H * Dv)
    out = linear(ctx.astype(cdt), wo, params["bo"], out_dtype=orig_dtype,
                 block_rows=block_rows)
    return out.reshape(B, L, d_model), None


def init_params(key, d_model, n_heads, d_keys=None, d_values=None,
                dtype=jnp.float32):
    d_keys = d_keys or d_model // n_heads
    d_values = d_values or d_model // n_heads
    ks = jax.random.split(key, 8)

    def lin_init(kw, kb, fan_in, fan_out):
        bound = 1.0 / math.sqrt(fan_in)     # PyTorch nn.Linear default init
        w = jax.random.uniform(kw, (fan_out, fan_in), dtype, -bound, bound)
        b = jax.random.uniform(kb, (fan_out,), dtype, -bound, bound)
        return w.T, b                        # stored as (Din, Dout)

    wq, bq = lin_init(ks[0], ks[1], d_model, d_keys * n_heads)
    wk, bk = lin_init(ks[2], ks[3], d_model, d_keys * n_heads)
    wv, bv = lin_init(ks[4], ks[5], d_model, d_values * n_heads)
    wo, bo = lin_init(ks[6], ks[7], d_values * n_heads, d_model)
    return dict(wq=wq, bq=bq, wk=wk, bk=bk, wv=wv, bv=bv, wo=wo, bo=bo)


# ----------------------------------------------------------------------------
# Pure-JAX reference
# ----------------------------------------------------------------------------

def reference_forward(params, queries, keys, values, n_heads, mix=False):
    B, L, d_model = queries.shape
    S = keys.shape[1]
    H = n_heads
    q = queries.reshape(B * L, d_model) @ params["wq"] + params["bq"]
    k = keys.reshape(B * S, d_model) @ params["wk"] + params["bk"]
    v = values.reshape(B * S, d_model) @ params["wv"] + params["bv"]
    E = q.shape[-1] // H
    Dv = v.shape[-1] // H
    q = q.reshape(B, L, H, E)
    k = k.reshape(B, S, H, E)
    v = v.reshape(B, S, H, Dv)
    scores = jnp.einsum("blhe,bshe->bhls", q, k) / math.sqrt(E)
    A = jax.nn.softmax(scores, axis=-1)
    out = jnp.einsum("bhls,bshd->blhd", A, v)
    if mix:
        out = out.transpose(0, 2, 1, 3)
    out = out.reshape(B, L, H * Dv)
    return out @ params["wo"] + params["bo"]


if __name__ == "__main__":
    B, L, S, d_model, n_heads = 2, 8, 8, 32, 4

    key = jax.random.PRNGKey(0)
    kp, kq, kk, kv = jax.random.split(key, 4)
    params = init_params(kp, d_model, n_heads)

    queries = jax.random.normal(kq, (B, L, d_model), jnp.float32)
    keys = jax.random.normal(kk, (B, S, d_model), jnp.float32)
    values = jax.random.normal(kv, (B, S, d_model), jnp.float32)

    # 1) cross-attention, mix=False (fused output projection).
    out, attn = attention_layer_forward(params, queries, keys, values,
                                        attn_mask=None, n_heads=n_heads)
    out = jax.block_until_ready(out)
    ref = reference_forward(params, queries, keys, values, n_heads)
    assert out.shape == (B, L, d_model) and attn is None
    assert jnp.allclose(out, ref, atol=2e-2, rtol=2e-2), "mix=False mismatch"

    # 2) self-attention (fused QKV projection fast path).
    out_s, _ = attention_layer_forward(params, queries, queries, queries,
                                       n_heads=n_heads)
    out_s = jax.block_until_ready(out_s)
    ref_s = reference_forward(params, queries, queries, queries, n_heads)
    assert jnp.allclose(out_s, ref_s, atol=2e-2, rtol=2e-2), "self-attn mismatch"

    # 3) mix=True path (head-major context kernel, free re-interleave).
    out_m, _ = attention_layer_forward(params, queries, keys, values,
                                       n_heads=n_heads, mix=True)
    out_m = jax.block_until_ready(out_m)
    ref_m = reference_forward(params, queries, keys, values, n_heads, mix=True)
    assert jnp.allclose(out_m, ref_m, atol=2e-2, rtol=2e-2), "mix=True mismatch"

    # 4) bf16 MXU inputs, f32 accumulation.
    out_bf, _ = attention_layer_forward(params, queries, keys, values,
                                        n_heads=n_heads,
                                        compute_dtype=jnp.bfloat16)
    out_bf = jax.block_until_ready(out_bf)
    assert out_bf.dtype == jnp.float32
    assert jnp.allclose(out_bf, ref, atol=1e-1, rtol=1e-1), "bf16 mismatch"

    # 5) tiled / padded / key-masked flash path (L, S not tile-aligned).
    L2, S2 = 20, 12
    q2 = jax.random.normal(jax.random.fold_in(key, 1), (B, L2, d_model))
    k2 = jax.random.normal(jax.random.fold_in(key, 2), (B, S2, d_model))
    v2 = jax.random.normal(jax.random.fold_in(key, 3), (B, S2, d_model))
    out2, _ = attention_layer_forward(params, q2, k2, v2, n_heads=n_heads,
                                      block_rows=16, block_q=8, block_k=8)
    out2 = jax.block_until_ready(out2)
    ref2 = reference_forward(params, q2, k2, v2, n_heads)
    assert out2.shape == (B, L2, d_model)
    assert jnp.allclose(out2, ref2, atol=2e-2, rtol=2e-2), "tiled path mismatch"

    print("KERNEL_OK")
</pallas_src>

<mosaic_0001>
module attributes {stable_mosaic.version = 11 : i64} {
  func.func @_linear_kernel(%arg0: i32, %arg1: memref<16x32xf32, #tpu.memory_space<vmem>>, %arg2: memref<32x32xf32, #tpu.memory_space<vmem>>, %arg3: memref<1x32xf32, #tpu.memory_space<vmem>>, %arg4: memref<16x32xf32, #tpu.memory_space<vmem>>) attributes {dimension_semantics = [#tpu.dimension_semantics<parallel>], iteration_bounds = array<i64: 1>, scalar_prefetch = 0 : i64, scratch_operands = 0 : i64, tpu.core_type = #tpu.core_type<tc>, window_params = [{transform_indices = @transform_0, window_bounds = array<i64: 16, 32>}, {pipeline_mode = #tpu.pipeline_mode<synchronous>, transform_indices = @transform_1, window_bounds = array<i64: 32, 32>}, {pipeline_mode = #tpu.pipeline_mode<synchronous>, transform_indices = @transform_2, window_bounds = array<i64: 1, 32>}, {transform_indices = @transform_3, window_bounds = array<i64: 16, 32>}]} {
    %c0 = arith.constant 0 : index
    %c0_0 = arith.constant 0 : index
    %0 = vector.load %arg1[%c0, %c0_0] : memref<16x32xf32, #tpu.memory_space<vmem>>, vector<16x32xf32>
    %c0_1 = arith.constant 0 : index
    %c0_2 = arith.constant 0 : index
    %1 = vector.load %arg2[%c0_1, %c0_2] : memref<32x32xf32, #tpu.memory_space<vmem>>, vector<32x32xf32>
    %cst = arith.constant dense<0.000000e+00> : vector<16x32xf32>
    %2 = tpu.matmul %0, %1, %cst {dimension_numbers = #tpu.dot_dimension_numbers<[1], [0], [0], [1], [0, 0, 1, 1], [], []>} : vector<16x32xf32>, vector<32x32xf32>, vector<16x32xf32> -> vector<16x32xf32>
    %c0_3 = arith.constant 0 : index
    %c0_4 = arith.constant 0 : index
    %3 = vector.load %arg3[%c0_3, %c0_4] : memref<1x32xf32, #tpu.memory_space<vmem>>, vector<1x32xf32>
    %4 = vector.broadcast %3 : vector<1x32xf32> to vector<16x32xf32>
    %5 = arith.addf %2, %4 : vector<16x32xf32>
    %c0_5 = arith.constant 0 : index
    %c0_6 = arith.constant 0 : index
    %6 = vector.load %arg4[%c0_5, %c0_6] : memref<16x32xf32, #tpu.memory_space<vmem>>, vector<16x32xf32>
    tpu.vector_store %arg4[%c0_5, %c0_6], %5 {strides = array<i32>} : memref<16x32xf32, #tpu.memory_space<vmem>>, vector<16x32xf32>,
    return
  }
  func.func @transform_0(%arg0: i32) -> (i32, i32) {
    %c0_i32 = arith.constant 0 : i32
    %c0_i32_0 = arith.constant 0 : i32
    return %arg0, %c0_i32 : i32, i32
  }
  func.func @transform_1(%arg0: i32) -> (i32, i32) {
    %c0_i32 = arith.constant 0 : i32
    %c0_i32_0 = arith.constant 0 : i32
    %c0_i32_1 = arith.constant 0 : i32
    return %c0_i32, %c0_i32_0 : i32, i32
  }
  func.func @transform_2(%arg0: i32) -> (i32, i32) {
    %c0_i32 = arith.constant 0 : i32
    %c0_i32_0 = arith.constant 0 : i32
    %c0_i32_1 = arith.constant 0 : i32
    return %c0_i32, %c0_i32_0 : i32, i32
  }
  func.func @transform_3(%arg0: i32) -> (i32, i32) {
    %c0_i32 = arith.constant 0 : i32
    %c0_i32_0 = arith.constant 0 : i32
    return %arg0, %c0_i32 : i32, i32
  }
}

</mosaic_0001>

<bundles_post_ra>
// kernel: tpu_custom_call.1
= control target key start
LH: loop header
LB: loop body
LE: loop exit
PB: predicated region body
PF: predicated region fallthrough
CT: control target
= control target key end

     0   :  { %8 = vsyncpa [#allocation3], 0  ;;  %s249_s0 = inlined_call_operand.hbm [shape: f32[16,32], index: 0, kind: input, shape index: {}]   ;;  %s250_s1 = inlined_call_operand.hbm [shape: f32[32,32], index: 1, kind: input, shape index: {}]   ;;  %s251_s2 = inlined_call_operand.vmem [shape: f32[1,32], index: 2, kind: input, shape index: {}]   ;;  %s252_s3 = inlined_call_operand.hbm [shape: f32[16,32], index: 3, kind: output, shape index: {}]  }
   0x1   :  { %9 = vsyncpa [#allocation6], 0 }
   0x2   :  { %10 = vsyncpa [#allocation4], 0  ;;  %s15_s14 = sshll.u32 %s249_s0, 4  ;;  %s199_s15 = smov [#allocation2]   ;;  %s16_s14 = int_to_ptr.hbm [resolvable:$true] %s15_s14 }
   0x3   :  { %s17_s16 = sshll.u32 %s199_s15, 4  ;;  %s28_s19 = sshll.u32 %s250_s1, 4  ;;  %s18_s16 = int_to_ptr.vmem [resolvable:$true] %s17_s16  ;;  %s29_s19 = int_to_ptr.hbm [resolvable:$true] %s28_s19 }
   0x4   :  { %s200_s20 = smov 128   ;;  %s201_s21 = smov 8  }
   0x5   :  { %23 = dma.hbm_to_vmem [thread:$0]  %s16_s14, 256, %s18_s16, [#allocation3], %s200_s20, %s200_s20, %s201_s21  }
   0x6   :  { %s202_s22 = smov [#allocation5]  }
   0x7   :  { %s30_s23 = sshll.u32 %s202_s22, 4  ;;  %s31_s23 = int_to_ptr.vmem [resolvable:$true] %s30_s23 }
   0x8   :  { %36 = dma.hbm_to_vmem [thread:$0]  %s29_s19, 512, %s31_s23, [#allocation6], %s200_s20, %s200_s20, %s201_s21  }
   0x9   :  { %193 = dma.done.wait [#allocation3], 256  }
   0xa   :  { %194 = vsyncadd [#allocation3], 4294967040 }
   0xb   :  { %195 = dma.done.wait [#allocation6], 512  }
   0xc   :  { %196 = vsyncadd [#allocation6], 4294966784  ;;  %v52_v0 = vld [vmem:[#allocation5 + $0x18] sm:$0xff]  ;;  %v51_v1 = vld [vmem:[#allocation5 + $0x10] sm:$0xff]  ;;  %vm57_vm0 = vcmask 261120   ;;  %s203_s24 = smov [#allocation7]  }
   0xd   :  { %76 = vmatpush.msra.mxu0 %v52_v0  ;;  %111 = vmatpush.msra.mxu1 %v52_v0  ;;  %v50_v2 = vld [vmem:[#allocation5 + $0x8] sm:$0xff]  ;;  %v49_v3 = vld [vmem:[#allocation5] sm:$0xff]  ;;  %v47_v4 = vld [vmem:[#allocation2] sm:$0xff]  ;;  %s93_s25 = sshll.u32 %s203_s24, 4  ;;  %s95_s28 = sshll.u32 %s252_s3, 4  ;;  %s94_s25 = int_to_ptr.vmem [resolvable:$true] %s93_s25  ;;  %s96_s28 = int_to_ptr.hbm [resolvable:$true] %s95_s28 }
   0xe   :  { %v48_v5 = vld [vmem:[#allocation2 + $0x8] sm:$0xff]  ;;  %v120_v6 = vld [vmem:[%s251_s2] ss:$0 sm:$0xff] }
   0xf   :  { %77 = vmatpush.msra.mxu0 %v51_v1  ;;  %112 = vmatpush.msra.mxu1 %v51_v1 }
  0x11   :  { %78 = vmatpush.msra.mxu0 %v50_v2  ;;  %113 = vmatpush.msra.mxu1 %v50_v2 }
  0x13   :  { %79 = vmatpush.msra.mxu0 %v49_v3  ;;  %114 = vmatpush.msra.mxu1 %v49_v3 }
  0x14   :  { %109 = vmatmul.msk.f32.vlgmr.msra.gmra.mxu0 %vm57_vm0, %v47_v4  ;;  %110 = vmatmul.msk.f32.vlgmr.msra.gmra.mxu1 %vm57_vm0, %v48_v5 }
  0x91   :  { %v81_v7 = vpop.f32.mrf.mxu0  ;;  %v84_v8 = vpop.f32.mrf.mxu1 }
  0x92   :  { %v82_v9 = vadd.f32 %v120_v6, %v81_v7  ;;  %v85_v10 = vadd.f32 %v120_v6, %v84_v8 }
  0x94   :  { %87 = vst.msk [vmem:[#allocation7] sm:$0xff] %vm57_vm0, %v82_v9 }
  0x95   :  { %88 = vst.msk [vmem:[#allocation7 + $0x8] sm:$0xff] %vm57_vm0, %v85_v10 }
  0x96   :  { %101 = dma.vmem_to_hbm [thread:$0]  %s94_s25, 256, %s96_s28, [#allocation4], %s200_s20, %s200_s20, %s201_s21  }
  0x97   :  { %197 = dma.done.wait [#allocation4], 256  }
  0x98   :  { %198 = vsyncadd [#allocation4], 4294967040 }
  0x99   :  { %106 = vsyncpa [#allocation3], 1 }
  0x9a   :  { %107 = vsyncpa [#allocation6], 1 }
  0x9b   :  { %108 = vsyncpa [#allocation4], 1 }

</bundles_post_ra>
